<compile_context>
chip_gen: v5e
topology: v5e:2x2
jax: 0.10.0
libtpu: 0.0.40
codegen_flags: <defaults>
</compile_context>

<pallas_src>
import functools

import jax
import jax.numpy as jnp
from jax import lax
from jax.experimental import pallas as pl
from jax.experimental.pallas import tpu as pltpu

_NEG_BIG = -1e30  # finite "-inf" so masked lanes never create inf/NaN arithmetic


def _round_up(n, m):
    return ((n + m - 1) // m) * m


def pvnet_kernel(x_ref, w_in_ref, b_in_ref, w_av_ref, b_av_ref, out_ref, *, n_actions):
    # Hidden layer: h = relu(x @ W_in + b_in).  x arrives f32 from HBM and is
    # cast to bf16 here (one VPU pass hidden under the memory-bound DMA)
    # instead of in a separate wrapper-side XLA pass over the whole batch.
    x = x_ref[...].astype(jnp.bfloat16)
    h = jnp.dot(x, w_in_ref[...], preferred_element_type=jnp.float32)
    h = jnp.maximum(h + b_in_ref[...], 0.0)

    # Fused action+value head: single lane-dense (tb, PAD) matmul, f32 accumulate.
    logits = (jnp.dot(h.astype(jnp.bfloat16), w_av_ref[...],
                      preferred_element_type=jnp.float32) + b_av_ref[...])

    col = lax.broadcasted_iota(jnp.int32, logits.shape, 1)
    is_action = col < n_actions

    # Stable log-softmax over the action columns only (value + pad columns masked).
    # Reductions kept in f32 (safe on v5e: no bf16 VALU/EUP there).
    # TODO(synk): if profiling shows the 128-lane XLU max/sum binds on v6e/v7x,
    # offload the sum to the (idle) MXU via a dot with a resident ones column.
    masked = jnp.where(is_action, logits, _NEG_BIG)
    m = jnp.max(masked, axis=1, keepdims=True)
    shifted = masked - m
    lse = jnp.log(jnp.sum(jnp.exp(shifted), axis=1, keepdims=True))

    # Action columns -> log-probs; value column passes through untouched; pad
    # columns carry their raw logits and are discarded by the wrapper.
    # Store bf16 to halve the HBM writeback stream.
    out_ref[...] = jnp.where(is_action, shifted - lse, logits).astype(out_ref.dtype)


def fuse_params(params):
    """Cast matmul operands to bf16 and fuse the two heads into one padded
    lane-dense (H, PAD) weight + (1, PAD) bias (zeros in the pad columns)."""
    H, A = params["w_a"].shape
    pad = _round_up(A + 1, 128)
    w_av = jnp.zeros((H, pad), jnp.float32)
    w_av = w_av.at[:, :A].set(params["w_a"]).at[:, A:A + 1].set(params["w_v"])
    b_av = jnp.zeros((1, pad), jnp.float32)
    b_av = b_av.at[:, :A].set(params["b_a"]).at[:, A:A + 1].set(params["b_v"])
    return {
        "w_in": params["w_in"].astype(jnp.bfloat16),
        "b_in": params["b_in"].astype(jnp.float32),
        "w_av": w_av.astype(jnp.bfloat16),
        "b_av": b_av,
        "n_actions": A,
        "pad": pad,
    }


def policy_value_forward(x, fused, *, tile_b=1024):
    """x: [B, D_in] float32; fused: output of fuse_params.
    Returns (log_probs [B, A] bf16, value [B, 1] f32)."""
    B, D_in = x.shape
    H = fused["w_in"].shape[1]
    A = fused["n_actions"]
    PAD = fused["pad"]

    # Pad the batch only to a multiple of 16 (bf16 packs 16 sublanes per vreg);
    # never round B up to a full tile -- the grid uses cdiv instead.
    B_pad = _round_up(B, 16)
    if B_pad != B:
        x = jnp.pad(x, ((0, B_pad - B), (0, 0)))

    tb = min(tile_b, B_pad)
    if B_pad >= 32:
        # v7x has 2 TensorCores that only share work along a "parallel" grid
        # axis: keep at least 2 grid steps when the batch allows it.
        tb = min(tb, _round_up((B_pad + 1) // 2, 16))
    tb = max(16, (tb // 16) * 16)
    grid = (pl.cdiv(B_pad, tb),)

    # VMEM budget: resident bf16 weights (constant index_map -> single-buffered)
    # + double-buffered f32 x tile and bf16 out tile, with modest headroom.
    # Capped at 32 MiB so it stays comfortable under v7x's 64 MiB physical VMEM.
    weight_bytes = (D_in * H + H * PAD) * 2 + (H + PAD) * 4
    tile_bytes = 2 * (tb * D_in * 4) + 2 * (tb * PAD * 2)
    vmem_limit = min(32 << 20, max(16 << 20, 2 * (weight_bytes + tile_bytes)))

    kernel = functools.partial(pvnet_kernel, n_actions=A)
    fused_out = pl.pallas_call(
        kernel,
        out_shape=jax.ShapeDtypeStruct((B_pad, PAD), jnp.bfloat16),
        grid=grid,
        in_specs=[
            pl.BlockSpec((tb, D_in), lambda i: (i, 0)),   # x tile (f32, pipelined)
            pl.BlockSpec((D_in, H), lambda i: (0, 0)),    # W_in  (VMEM-resident)
            pl.BlockSpec((1, H), lambda i: (0, 0)),       # b_in
            pl.BlockSpec((H, PAD), lambda i: (0, 0)),     # fused head weight
            pl.BlockSpec((1, PAD), lambda i: (0, 0)),     # fused head bias
        ],
        out_specs=pl.BlockSpec((tb, PAD), lambda i: (i, 0)),  # lane-dense bf16 store
        compiler_params=pltpu.CompilerParams(
            dimension_semantics=("parallel",),
            vmem_limit_bytes=vmem_limit,
        ),
    )(x, fused["w_in"], fused["b_in"], fused["w_av"], fused["b_av"])

    # NOTE: under jit, downstream consumers can read the fused (B_pad, 128) slab
    # directly; these slices exist only to match the module's (action, value)
    # return contract.  Value is upcast to f32 for loss/GAE use.
    action = fused_out[:B, :A]
    value = fused_out[:B, A:A + 1].astype(jnp.float32)
    return action, value


def make_params(key, d_in, hidden, n_actions):
    """Deterministic synthetic parameters (nn.Linear shapes, pre-transposed to (in, out))."""
    k1, k2, k3, k4, k5, k6 = jax.random.split(key, 6)
    s_in = 1.0 / jnp.sqrt(d_in)
    s_h = 1.0 / jnp.sqrt(hidden)
    return {
        "w_in": jax.random.uniform(k1, (d_in, hidden), jnp.float32, -s_in, s_in),
        "b_in": jax.random.uniform(k2, (1, hidden), jnp.float32, -s_in, s_in),
        "w_a": jax.random.uniform(k3, (hidden, n_actions), jnp.float32, -s_h, s_h),
        "b_a": jax.random.uniform(k4, (1, n_actions), jnp.float32, -s_h, s_h),
        "w_v": jax.random.uniform(k5, (hidden, 1), jnp.float32, -s_h, s_h),
        "b_v": jax.random.uniform(k6, (1, 1), jnp.float32, -s_h, s_h),
    }


def reference_forward(x, p):
    h = jnp.maximum(x @ p["w_in"] + p["b_in"], 0.0)
    logits = h @ p["w_a"] + p["b_a"]
    action = jax.nn.log_softmax(logits, axis=1)
    value = h @ p["w_v"] + p["b_v"]
    return action, value


if __name__ == "__main__":
    # NOTE: at B=8 the whole call is launch + DMA fixed overhead; batch many
    # environment steps per call (B >~ 256-1024) before expecting a speedup.
    B, D_IN, HIDDEN, N_ACTIONS = 8, 128, 128, 6  # Pommerman: 6 discrete actions

    key = jax.random.PRNGKey(0)
    kx, kp = jax.random.split(key)
    x = jax.random.normal(kx, (B, D_IN), dtype=jnp.float32)
    params = make_params(kp, D_IN, HIDDEN, N_ACTIONS)
    fused = fuse_params(params)

    action, value = jax.block_until_ready(policy_value_forward(x, fused))

    ref_action, ref_value = reference_forward(x, params)
    assert action.shape == (B, N_ACTIONS) and value.shape == (B, 1)
    # bf16 matmul operands + bf16 output store vs. pure-f32 reference -> loose tolerance.
    assert jnp.allclose(action.astype(jnp.float32), ref_action, atol=5e-2, rtol=5e-2)
    assert jnp.allclose(value, ref_value, atol=5e-2, rtol=5e-2)

    print("KERNEL_OK")
</pallas_src>

<mosaic_0001>
module attributes {stable_mosaic.version = 11 : i64} {
  func.func @pvnet_kernel(%arg0: i32, %arg1: memref<16x128xf32, #tpu.memory_space<vmem>>, %arg2: memref<128x128xbf16, #tpu.memory_space<vmem>>, %arg3: memref<1x128xf32, #tpu.memory_space<vmem>>, %arg4: memref<128x128xbf16, #tpu.memory_space<vmem>>, %arg5: memref<1x128xf32, #tpu.memory_space<vmem>>, %arg6: memref<16x128xbf16, #tpu.memory_space<vmem>>) attributes {dimension_semantics = [#tpu.dimension_semantics<parallel>], iteration_bounds = array<i64: 1>, scalar_prefetch = 0 : i64, scratch_operands = 0 : i64, tpu.core_type = #tpu.core_type<tc>, window_params = [{transform_indices = @transform_0, window_bounds = array<i64: 16, 128>}, {pipeline_mode = #tpu.pipeline_mode<synchronous>, transform_indices = @transform_1, window_bounds = array<i64: 128, 128>}, {pipeline_mode = #tpu.pipeline_mode<synchronous>, transform_indices = @transform_2, window_bounds = array<i64: 1, 128>}, {pipeline_mode = #tpu.pipeline_mode<synchronous>, transform_indices = @transform_3, window_bounds = array<i64: 128, 128>}, {pipeline_mode = #tpu.pipeline_mode<synchronous>, transform_indices = @transform_4, window_bounds = array<i64: 1, 128>}, {transform_indices = @transform_5, window_bounds = array<i64: 16, 128>}]} {
    %c0 = arith.constant 0 : index
    %c0_0 = arith.constant 0 : index
    %0 = vector.load %arg1[%c0, %c0_0] : memref<16x128xf32, #tpu.memory_space<vmem>>, vector<16x128xf32>
    %1 = arith.truncf %0 : vector<16x128xf32> to vector<16x128xbf16>
    %c0_1 = arith.constant 0 : index
    %c0_2 = arith.constant 0 : index
    %2 = vector.load %arg2[%c0_1, %c0_2] : memref<128x128xbf16, #tpu.memory_space<vmem>>, vector<128x128xbf16>
    %cst = arith.constant dense<0.000000e+00> : vector<16x128xf32>
    %3 = tpu.matmul %1, %2, %cst {dimension_numbers = #tpu.dot_dimension_numbers<[1], [0], [0], [1], [0, 0, 1, 1], [], []>} : vector<16x128xbf16>, vector<128x128xbf16>, vector<16x128xf32> -> vector<16x128xf32>
    %c0_3 = arith.constant 0 : index
    %c0_4 = arith.constant 0 : index
    %4 = vector.load %arg3[%c0_3, %c0_4] : memref<1x128xf32, #tpu.memory_space<vmem>>, vector<1x128xf32>
    %5 = vector.broadcast %4 : vector<1x128xf32> to vector<16x128xf32>
    %6 = arith.addf %3, %5 : vector<16x128xf32>
    %cst_5 = arith.constant 0.000000e+00 : f32
    %7 = vector.broadcast %cst_5 : f32 to vector<16x128xf32>
    %8 = arith.maximumf %6, %7 : vector<16x128xf32>
    %9 = arith.truncf %8 : vector<16x128xf32> to vector<16x128xbf16>
    %c0_6 = arith.constant 0 : index
    %c0_7 = arith.constant 0 : index
    %10 = vector.load %arg4[%c0_6, %c0_7] : memref<128x128xbf16, #tpu.memory_space<vmem>>, vector<128x128xbf16>
    %cst_8 = arith.constant dense<0.000000e+00> : vector<16x128xf32>
    %11 = tpu.matmul %9, %10, %cst_8 {dimension_numbers = #tpu.dot_dimension_numbers<[1], [0], [0], [1], [0, 0, 1, 1], [], []>} : vector<16x128xbf16>, vector<128x128xbf16>, vector<16x128xf32> -> vector<16x128xf32>
    %c0_9 = arith.constant 0 : index
    %c0_10 = arith.constant 0 : index
    %12 = vector.load %arg5[%c0_9, %c0_10] : memref<1x128xf32, #tpu.memory_space<vmem>>, vector<1x128xf32>
    %13 = vector.broadcast %12 : vector<1x128xf32> to vector<16x128xf32>
    %14 = arith.addf %11, %13 : vector<16x128xf32>
    %15 = tpu.iota {dimensions = array<i32: 1>} : vector<16x128xi32>
    %c6_i32 = arith.constant 6 : i32
    %16 = vector.broadcast %c6_i32 : i32 to vector<16x128xi32>
    %17 = arith.cmpi slt, %15, %16 : vector<16x128xi32>
    %cst_11 = arith.constant -1.000000e+30 : f32
    %18 = vector.broadcast %cst_11 : f32 to vector<16x128xf32>
    %19 = arith.select %17, %14, %18 : vector<16x128xi1>, vector<16x128xf32>
    %cst_12 = arith.constant dense<0xFF800000> : vector<16xf32>
    %20 = vector.multi_reduction <maximumf>, %19, %cst_12 [1] : vector<16x128xf32> to vector<16xf32>
    %21 = vector.shape_cast %20 : vector<16xf32> to vector<16x1xf32>
    %22 = vector.broadcast %21 : vector<16x1xf32> to vector<16x128xf32>
    %23 = arith.subf %19, %22 : vector<16x128xf32>
    %24 = math.exp %23 : vector<16x128xf32>
    %cst_13 = arith.constant dense<0.000000e+00> : vector<16xf32>
    %25 = vector.multi_reduction <add>, %24, %cst_13 [1] : vector<16x128xf32> to vector<16xf32>
    %26 = vector.shape_cast %25 : vector<16xf32> to vector<16x1xf32>
    %27 = math.log %26 : vector<16x1xf32>
    %28 = vector.broadcast %27 : vector<16x1xf32> to vector<16x128xf32>
    %29 = arith.subf %23, %28 : vector<16x128xf32>
    %30 = arith.select %17, %29, %14 : vector<16x128xi1>, vector<16x128xf32>
    %31 = arith.truncf %30 : vector<16x128xf32> to vector<16x128xbf16>
    %c0_14 = arith.constant 0 : index
    %c0_15 = arith.constant 0 : index
    %32 = vector.load %arg6[%c0_14, %c0_15] : memref<16x128xbf16, #tpu.memory_space<vmem>>, vector<16x128xbf16>
    tpu.vector_store %arg6[%c0_14, %c0_15], %31 {strides = array<i32>} : memref<16x128xbf16, #tpu.memory_space<vmem>>, vector<16x128xbf16>,
    return
  }
  func.func @transform_0(%arg0: i32) -> (i32, i32) {
    %c0_i32 = arith.constant 0 : i32
    %c0_i32_0 = arith.constant 0 : i32
    return %arg0, %c0_i32 : i32, i32
  }
  func.func @transform_1(%arg0: i32) -> (i32, i32) {
    %c0_i32 = arith.constant 0 : i32
    %c0_i32_0 = arith.constant 0 : i32
    %c0_i32_1 = arith.constant 0 : i32
    return %c0_i32, %c0_i32_0 : i32, i32
  }
  func.func @transform_2(%arg0: i32) -> (i32, i32) {
    %c0_i32 = arith.constant 0 : i32
    %c0_i32_0 = arith.constant 0 : i32
    %c0_i32_1 = arith.constant 0 : i32
    return %c0_i32, %c0_i32_0 : i32, i32
  }
  func.func @transform_3(%arg0: i32) -> (i32, i32) {
    %c0_i32 = arith.constant 0 : i32
    %c0_i32_0 = arith.constant 0 : i32
    %c0_i32_1 = arith.constant 0 : i32
    return %c0_i32, %c0_i32_0 : i32, i32
  }
  func.func @transform_4(%arg0: i32) -> (i32, i32) {
    %c0_i32 = arith.constant 0 : i32
    %c0_i32_0 = arith.constant 0 : i32
    %c0_i32_1 = arith.constant 0 : i32
    return %c0_i32, %c0_i32_0 : i32, i32
  }
  func.func @transform_5(%arg0: i32) -> (i32, i32) {
    %c0_i32 = arith.constant 0 : i32
    %c0_i32_0 = arith.constant 0 : i32
    return %arg0, %c0_i32 : i32, i32
  }
}

</mosaic_0001>

<bundles_post_ra>
// kernel: tpu_custom_call.1
= control target key start
LH: loop header
LB: loop body
LE: loop exit
PB: predicated region body
PF: predicated region fallthrough
CT: control target
= control target key end

     0   :  { %10 = vsyncpa [#allocation3], 0  ;;  %s563_s0 = inlined_call_operand.hbm [shape: f32[16,128], index: 0, kind: input, shape index: {}]   ;;  %s564_s1 = inlined_call_operand.hbm [shape: bf16[128,128], index: 1, kind: input, shape index: {}]   ;;  %s565_s2 = inlined_call_operand.vmem [shape: f32[1,128], index: 2, kind: input, shape index: {}]   ;;  %s566_s3 = inlined_call_operand.hbm [shape: bf16[128,128], index: 3, kind: input, shape index: {}]   ;;  %s567_s4 = inlined_call_operand.vmem [shape: f32[1,128], index: 4, kind: input, shape index: {}]   ;;  %s568_s5 = inlined_call_operand.hbm [shape: bf16[16,128], index: 5, kind: output, shape index: {}]  }
   0x1   :  { %11 = vsyncpa [#allocation6], 0  ;;  %s30_s20 = sshll.u32 %s564_s1, 4  ;;  %s31_s20 = int_to_ptr.hbm [resolvable:$true] %s30_s20 }
   0x2   :  { %12 = vsyncpa [#allocation4], 0  ;;  %s494_s21 = smov [#allocation5]   ;;  %s17_s25 = sshll.u32 %s563_s0, 4  ;;  %s18_s25 = int_to_ptr.hbm [resolvable:$true] %s17_s25 }
   0x3   :  { %s32_s22 = sshll.u32 %s494_s21, 4  ;;  %s495_s26 = smov 64   ;;  %s33_s22 = int_to_ptr.vmem [resolvable:$true] %s32_s22 }
   0x4   :  { %s496_s27 = smov 4   ;;  %s497_s28 = smov [#allocation2]  }
   0x5   :  { %38 = dma.hbm_to_vmem [thread:$0]  %s31_s20, 1024, %s33_s22, [#allocation6], %s495_s26, %s495_s26, %s496_s27  }
   0x6   :  { %s19_s29 = sshll.u32 %s497_s28, 4  ;;  %s498_s1 = smov 128   ;;  %s20_s29 = int_to_ptr.vmem [resolvable:$true] %s19_s29 }
   0x7   :  { %s499_s30 = smov 8   ;;  %s45_s8 = sshll.u32 %s566_s3, 4  ;;  %s46_s8 = int_to_ptr.hbm [resolvable:$true] %s45_s8 }
   0x8   :  { %25 = dma.hbm_to_vmem [thread:$0]  %s18_s25, 256, %s20_s29, [#allocation3], %s498_s1, %s498_s1, %s499_s30  }
   0x9   :  { %s500_s9 = smov [#allocation7]  }
   0xa   :  { %s47_s0 = sshll.u32 %s500_s9, 4  ;;  %s48_s0 = int_to_ptr.vmem [resolvable:$true] %s47_s0 }
   0xb   :  { %53 = dma.hbm_to_vmem [thread:$0]  %s46_s8, 1024, %s48_s0, [#allocation6], %s495_s26, %s495_s26, %s496_s27  }
   0xc   :  { %488 = dma.done.wait [#allocation3], 256  }
   0xd   :  { %489 = vsyncadd [#allocation3], 4294967040 }
   0xe   :  { %490 = dma.done.wait [#allocation6], 2048  }
   0xf   :  { %491 = vsyncadd [#allocation6], 4294965248  ;;  %v360_v0 = vld [vmem:[#allocation5 + $0x38] sm:$0xff]  ;;  %v359_v1 = vld [vmem:[#allocation5 + $0x30] sm:$0xff]  ;;  %v238_v27 = vlaneseq  ;;  %s275_s15 = sshll.u32 %s568_s5, 4  ;;  %s276_s15 = int_to_ptr.hbm [resolvable:$true] %s275_s15 }
  0x10   :  { %139 = vmatpush.bf16.msra.mxu0 %v360_v0  ;;  %v368_v2 = vld [vmem:[#allocation7 + $0x38] sm:$0xff]  ;;  %v367_v3 = vld [vmem:[#allocation7 + $0x30] sm:$0xff]  ;;  %v358_v4 = vld [vmem:[#allocation5 + $0x28] sm:$0xff] }
  0x11   :  { %224 = vmatpush.bf16.msra.mxu1 %v368_v2  ;;  %v366_v5 = vld [vmem:[#allocation7 + $0x28] sm:$0xff]  ;;  %v357_v6 = vld [vmem:[#allocation5 + $0x20] sm:$0xff]  ;;  %v356_v8 = vld [vmem:[#allocation5 + $0x18] sm:$0xff]  ;;  %v239_v28 = vand.u32 127, %v238_v27 }
  0x12   :  { %v365_v7 = vld [vmem:[#allocation7 + $0x20] sm:$0xff]  ;;  %v355_v9 = vld [vmem:[#allocation5 + $0x10] sm:$0xff]  ;;  %v354_v10 = vld [vmem:[#allocation5 + $0x8] sm:$0xff] }
  0x13   :  { %v353_v11 = vld [vmem:[#allocation5] sm:$0xff]  ;;  %v68_v12 = vld [vmem:[#allocation2] sm:$0xff]  ;;  %v69_v13 = vld [vmem:[#allocation2 + $0x8] sm:$0xff]  ;;  %vm240_vm0 = vcmp.lt.s32.totalorder %v239_v28, 6 }
  0x14   :  { %140 = vmatpush.bf16.msra.mxu0 %v359_v1  ;;  %v70_v14 = vpack.c.bf16 %v69_v13, %v68_v12  ;;  %v364_v15 = vld [vmem:[#allocation7 + $0x18] sm:$0xff]  ;;  %v363_v16 = vld [vmem:[#allocation7 + $0x10] sm:$0xff]  ;;  %v362_v17 = vld [vmem:[#allocation7 + $0x8] sm:$0xff] }
  0x15   :  { %225 = vmatpush.bf16.msra.mxu1 %v367_v3  ;;  %v361_v18 = vld [vmem:[#allocation7] sm:$0xff]  ;;  %v382_v20 = vld [vmem:[%s565_s2] ss:$0 sm:$0xff]  ;;  %s501_s2 = smov [#allocation8]  }
  0x16   :  { %v383_v29 = vld [vmem:[%s567_s4] ss:$0 sm:$0xff]  ;;  %s273_s4 = sshll.u32 %s501_s2, 4  ;;  %s274_s4 = int_to_ptr.vmem [resolvable:$true] %s273_s4 }
  0x18   :  { %141 = vmatpush.bf16.msra.mxu0 %v358_v4 }
  0x19   :  { %226 = vmatpush.bf16.msra.mxu1 %v366_v5 }
  0x1c   :  { %142 = vmatpush.bf16.msra.mxu0 %v357_v6 }
  0x1d   :  { %227 = vmatpush.bf16.msra.mxu1 %v365_v7 }
  0x20   :  { %143 = vmatpush.bf16.msra.mxu0 %v356_v8 }
  0x21   :  { %228 = vmatpush.bf16.msra.mxu1 %v364_v15 }
  0x24   :  { %144 = vmatpush.bf16.msra.mxu0 %v355_v9 }
  0x25   :  { %229 = vmatpush.bf16.msra.mxu1 %v363_v16 }
  0x28   :  { %145 = vmatpush.bf16.msra.mxu0 %v354_v10 }
  0x29   :  { %230 = vmatpush.bf16.msra.mxu1 %v362_v17 }
  0x2c   :  { %146 = vmatpush.bf16.msra.mxu0 %v353_v11 }
  0x2d   :  { %231 = vmatpush.bf16.msra.mxu1 %v361_v18 }
  0x2f   :  { %147 = vmatmul.bf16.vlgmr.msra.gmra.mxu0 %v70_v14 }
  0xac   :  { %v148_v19 = vpop.f32.mrf.mxu0 }
  0xad   :  { %v149_v21 = vadd.f32 %v382_v20, %v148_v19 }
  0xaf   :  { %v153_v24 = vmax.f32 %v149_v21, 0.0 }
  0xb4   :  { %v150_v22 = vpop.f32.mrf.mxu0 }
  0xb5   :  { %v151_v23 = vadd.f32 %v382_v20, %v150_v22 }
  0xb7   :  { %v154_v25 = vmax.f32 %v151_v23, 0.0 }
  0xb9   :  { %v155_v26 = vpack.c.bf16 %v154_v25, %v153_v24 }
  0xbb   :  { %232 = vmatmul.bf16.vlgmr.msra.gmra.mxu1 %v155_v26 }
 0x138   :  { %v233_v30 = vpop.f32.mrf.mxu1 }
 0x139   :  { %v234_v31 = vadd.f32 %v383_v29, %v233_v30 }
 0x13b   :  { %v241_v32 = vsel %vm240_vm0, %v234_v31, -1e+30 }
 0x13c   :  { %243 = vmax.xlane.f32.xlu0 %v241_v32 }
 0x140   :  { %v235_v33 = vpop.f32.mrf.mxu1 }
 0x141   :  { %v236_v34 = vadd.f32 %v383_v29, %v235_v33 }
 0x143   :  { %v242_v35 = vsel %vm240_vm0, %v236_v34, -1e+30 }
 0x144   :  { %245 = vmax.xlane.f32.xlu0 %v242_v35 }
 0x1af   :  { %v244_v36 = vpop.xlane.xlu0 %243 }
 0x1b0   :  { %v247_v37 = vsub.f32 %v241_v32, %v244_v36 }
 0x1b2   :  { %v249_v38 = vmul.f32 1.442695, %v247_v37 }
 0x1b4   :  { %384 = vpow2.f32 %v249_v38 }
 0x1b7   :  { %v246_v39 = vpop.xlane.xlu0 %245 }
 0x1b8   :  { %v248_v40 = vsub.f32 %v242_v35, %v246_v39 }
 0x1ba   :  { %v385_v41 = vpop.eup %384  ;;  %v251_v42 = vmul.f32 1.442695, %v248_v40 }
 0x1bb   :  { %253 = vadd.xlane.f32.xlu1 %v385_v41 }
 0x1bc   :  { %386 = vpow2.f32 %v251_v42 }
 0x1c2   :  { %v387_v43 = vpop.eup %386 }
 0x1c3   :  { %255 = vadd.xlane.f32.xlu1 %v387_v43 }
 0x22e   :  { %v254_v44 = vpop.xlane.xlu1 %253 }
 0x22f   :  { %388 = vlog2.f32 %v254_v44 }
 0x235   :  { %v389_v46 = vpop.eup %388 }
 0x236   :  { %v256_v45 = vpop.xlane.xlu1 %255  ;;  %v258_v47 = vmul.f32 0.6931472, %v389_v46 }
 0x237   :  { %390 = vlog2.f32 %v256_v45 }
 0x238   :  { %v261_v49 = vsub.f32 %v247_v37, %v258_v47 }
 0x23a   :  { %v263_v52 = vsel %vm240_vm0, %v261_v49, %v234_v31 }
 0x23d   :  { %v391_v48 = vpop.eup %390 }
 0x23e   :  { %v260_v50 = vmul.f32 0.6931472, %v391_v48 }
 0x240   :  { %v262_v51 = vsub.f32 %v248_v40, %v260_v50 }
 0x242   :  { %v264_v53 = vsel %vm240_vm0, %v262_v51, %v236_v34 }
 0x243   :  { %v372_v54 = vpack.c.bf16 %v264_v53, %v263_v52 }
 0x245   :  { %373 = vst [vmem:[#allocation8] sm:$0xff] %v372_v54  }
 0x246   :  { %281 = dma.vmem_to_hbm [thread:$0]  %s274_s4, 128, %s276_s15, [#allocation4], %s495_s26, %s495_s26, %s496_s27  }
 0x247   :  { %492 = dma.done.wait [#allocation4], 128  }
 0x248   :  { %493 = vsyncadd [#allocation4], 4294967168 }
 0x249   :  { %286 = vsyncpa [#allocation3], 1 }
 0x24a   :  { %287 = vsyncpa [#allocation6], 1 }
 0x24b   :  { %288 = vsyncpa [#allocation4], 1 }

</bundles_post_ra>
